<compile_context>
chip_gen: v7x
topology: tpu7x:2x2x1
jax: 0.10.0
libtpu: 0.0.40
codegen_flags: <defaults>
</compile_context>

<pallas_src>
import functools

import jax
import jax.numpy as jnp
from jax.experimental import pallas as pl
from jax.experimental.pallas import tpu as pltpu


def _round_up(x, m):
    return ((x + m - 1) // m) * m


def _linear_kernel(x_ref, w_ref, b_ref, o_ref):
    # x_ref: (TM, K), w_ref: (K, Np), b_ref: (1, Np), o_ref: (TM, Np)
    acc = jnp.dot(x_ref[...], w_ref[...], preferred_element_type=jnp.float32)
    o_ref[...] = (acc + b_ref[...]).astype(o_ref.dtype)


def _pick_tm(m_pad, k, n_pad, budget_bytes=24 * 1024 * 1024):
    """Pick an M-tile so the double-buffered working set fits a VMEM budget."""
    fixed = 4 * (2 * k * n_pad + 2 * n_pad)       # W + bias (double-buffered)
    per_row = 4 * 2 * (k + n_pad)                 # x tile + out tile rows (2x buffered)
    avail = max(budget_bytes - fixed, per_row * 8)
    tm = max(8, min(512, avail // per_row))
    tm = max(8, (tm // 8) * 8)                    # multiple of 8 sublanes
    return min(tm, m_pad)


@jax.jit
def _pallas_linear(x2d, w_t, b_row):
    """y = x2d @ w_t + b_row via an M-tiled, pipelined Pallas kernel.

    x2d:   (M, K)  float32   (M is a multiple of 8; padded by caller if needed)
    w_t:   (K, Np) float32   pre-transposed, Np a multiple of 128
    b_row: (1, Np) float32
    """
    M, K = x2d.shape
    _, Np = w_t.shape

    TM = _pick_tm(M, K, Np)
    grid_m = pl.cdiv(M, TM)

    # Rough per-call VMEM working set (double-buffered x/out tiles + W + bias).
    vmem_est = 4 * (2 * TM * K + 2 * K * Np + 2 * Np + 2 * TM * Np)
    vmem_limit = int(min(max(2 * vmem_est, 16 * 1024 * 1024), 64 * 1024 * 1024))

    cost = pl.CostEstimate(
        flops=2 * M * K * Np,
        transcendentals=0,
        bytes_accessed=4 * (M * K + K * Np + Np + M * Np),
    )

    return pl.pallas_call(
        _linear_kernel,
        out_shape=jax.ShapeDtypeStruct((M, Np), x2d.dtype),
        grid_spec=pltpu.PrefetchScalarGridSpec(
            num_scalar_prefetch=0,
            grid=(grid_m,),
            in_specs=[
                pl.BlockSpec((TM, K), lambda i: (i, 0)),   # row tile of x
                pl.BlockSpec((K, Np), lambda i: (0, 0)),   # full (pre-T) weight
                pl.BlockSpec((1, Np), lambda i: (0, 0)),   # bias row
            ],
            out_specs=pl.BlockSpec((TM, Np), lambda i: (i, 0)),
        ),
        compiler_params=pltpu.CompilerParams(
            dimension_semantics=("parallel",),             # v7x: shard M tiles over 2 TCs
            vmem_limit_bytes=vmem_limit,
        ),
        cost_estimate=cost,
    )(x2d, w_t, b_row)


def _init_linear_params(key, hidden_size, out_dim, use_orthogonal, gain):
    """Deterministic parameter init mirroring the torch init_() helper.

    Weight stored as (out_dim, hidden_size) like torch.nn.Linear, bias zeros.
    """
    if use_orthogonal:
        w = jax.nn.initializers.orthogonal(scale=gain)(
            key, (out_dim, hidden_size), jnp.float32
        )
    else:
        w = gain * jax.nn.initializers.glorot_uniform()(
            key, (out_dim, hidden_size), jnp.float32
        )
    b = jnp.zeros((out_dim,), jnp.float32)
    return w, b


class ACTLayerPallas:
    """JAX/Pallas re-implementation of ACTLayer's forward pass."""

    def __init__(self, act_dim, hidden_size, use_orthogonal, gain, key):
        self.multi_discrete = not isinstance(act_dim, int)
        self.hidden_size = hidden_size

        if self.multi_discrete:
            dims = list(act_dim)
            keys = jax.random.split(key, len(dims))
            self.params = [
                _init_linear_params(k, hidden_size, d, use_orthogonal, gain)
                for k, d in zip(keys, dims)
            ]
            self.head_dims = dims
        else:
            self.params = _init_linear_params(
                key, hidden_size, act_dim, use_orthogonal, gain
            )
            self.head_dims = [act_dim]

        # --- Build fused, pre-transposed, lane-padded kernel parameters ---
        # Concatenate all heads column-wise: W_t (K, N_total), b (N_total).
        if self.multi_discrete:
            w_t = jnp.concatenate([w.T for (w, _) in self.params], axis=1)
            b = jnp.concatenate([b for (_, b) in self.params], axis=0)
        else:
            w, b = self.params
            w_t = w.T
        n_total = int(w_t.shape[1])
        n_pad = max(128, _round_up(n_total, 128))
        self.n_total = n_total
        # Zero-pad output columns to a multiple of 128 -> lane-dense stores.
        self.w_t_pad = jnp.pad(w_t, ((0, 0), (0, n_pad - n_total)))
        self.b_pad = jnp.pad(b, ((0, n_pad - n_total),)).reshape(1, n_pad)

    def forward(self, x, no_sequence=False):
        # x: (seq, batch, hidden)
        seq, batch, hidden = x.shape
        assert hidden == self.hidden_size
        M = seq * batch
        x2d = x.reshape(M, hidden)

        # Pad rows to a multiple of 8 so the M-tile satisfies (8,128) rules.
        M_pad = _round_up(max(M, 8), 8)
        if M_pad != M:
            x2d = jnp.pad(x2d, ((0, M_pad - M), (0, 0)))

        y = _pallas_linear(x2d, self.w_t_pad, self.b_pad)       # (M_pad, N_pad)
        y = y[:M, : self.n_total].reshape(seq, batch, self.n_total)

        if self.multi_discrete:
            act_outs = []
            off = 0
            for d in self.head_dims:
                head = y[:, :, off:off + d]
                off += d
                if no_sequence:
                    head = head[0, :, :]
                act_outs.append(head)
            return act_outs
        else:
            if no_sequence:
                y = y[0, :, :]
            return y


if __name__ == "__main__":
    key = jax.random.PRNGKey(0)
    k_x, k_p, k_pm = jax.random.split(key, 3)

    seq, batch, hidden = 8, 2, 32
    act_dim = 5
    x = jax.random.normal(k_x, (seq, batch, hidden), dtype=jnp.float32)

    # --- single discrete action space ---
    layer = ACTLayerPallas(act_dim, hidden, use_orthogonal=True, gain=0.01, key=k_p)
    out = layer.forward(x, no_sequence=False)
    out = jax.block_until_ready(out)
    assert out.shape == (seq, batch, act_dim)

    out_ns = jax.block_until_ready(layer.forward(x, no_sequence=True))
    assert out_ns.shape == (batch, act_dim)

    # reference check against plain JAX
    w, b = layer.params
    ref = x @ w.T + b
    assert jnp.allclose(out, ref, atol=1e-5), "mismatch vs reference (single)"
    assert jnp.allclose(out_ns, ref[0], atol=1e-5), "mismatch vs reference (no_sequence)"

    # --- multi-discrete action space (list of heads) ---
    layer_md = ACTLayerPallas([3, 4], hidden, use_orthogonal=True, gain=0.01, key=k_pm)
    outs_md = layer_md.forward(x, no_sequence=True)
    outs_md = jax.block_until_ready(outs_md)
    assert outs_md[0].shape == (batch, 3) and outs_md[1].shape == (batch, 4)

    for (w_h, b_h), o_h in zip(layer_md.params, outs_md):
        ref_h = x[0] @ w_h.T + b_h
        assert jnp.allclose(o_h, ref_h, atol=1e-5), "mismatch vs reference (multi)"

    print("KERNEL_OK")
</pallas_src>

<mosaic_0001>
module attributes {stable_mosaic.version = 11 : i64} {
  func.func @_linear_kernel(%arg0: i32, %arg1: memref<16x32xf32, #tpu.memory_space<vmem>>, %arg2: memref<32x128xf32, #tpu.memory_space<vmem>>, %arg3: memref<1x128xf32, #tpu.memory_space<vmem>>, %arg4: memref<16x128xf32, #tpu.memory_space<vmem>>) attributes {dimension_semantics = [#tpu.dimension_semantics<parallel>], iteration_bounds = array<i64: 1>, scalar_prefetch = 0 : i64, scratch_operands = 0 : i64, tpu.core_type = #tpu.core_type<tc>, window_params = [{transform_indices = @transform_0, window_bounds = array<i64: 16, 32>}, {pipeline_mode = #tpu.pipeline_mode<synchronous>, transform_indices = @transform_1, window_bounds = array<i64: 32, 128>}, {pipeline_mode = #tpu.pipeline_mode<synchronous>, transform_indices = @transform_2, window_bounds = array<i64: 1, 128>}, {transform_indices = @transform_3, window_bounds = array<i64: 16, 128>}]} {
    %c0 = arith.constant 0 : index
    %c0_0 = arith.constant 0 : index
    %0 = vector.load %arg1[%c0, %c0_0] : memref<16x32xf32, #tpu.memory_space<vmem>>, vector<16x32xf32>
    %c0_1 = arith.constant 0 : index
    %c0_2 = arith.constant 0 : index
    %1 = vector.load %arg2[%c0_1, %c0_2] : memref<32x128xf32, #tpu.memory_space<vmem>>, vector<32x128xf32>
    %cst = arith.constant dense<0.000000e+00> : vector<16x128xf32>
    %2 = tpu.matmul %0, %1, %cst {dimension_numbers = #tpu.dot_dimension_numbers<[1], [0], [0], [1], [0, 0, 1, 1], [], []>} : vector<16x32xf32>, vector<32x128xf32>, vector<16x128xf32> -> vector<16x128xf32>
    %c0_3 = arith.constant 0 : index
    %c0_4 = arith.constant 0 : index
    %3 = vector.load %arg3[%c0_3, %c0_4] : memref<1x128xf32, #tpu.memory_space<vmem>>, vector<1x128xf32>
    %4 = vector.broadcast %3 : vector<1x128xf32> to vector<16x128xf32>
    %5 = arith.addf %2, %4 : vector<16x128xf32>
    %c0_5 = arith.constant 0 : index
    %c0_6 = arith.constant 0 : index
    %6 = vector.load %arg4[%c0_5, %c0_6] : memref<16x128xf32, #tpu.memory_space<vmem>>, vector<16x128xf32>
    tpu.vector_store %arg4[%c0_5, %c0_6], %5 {strides = array<i32>} : memref<16x128xf32, #tpu.memory_space<vmem>>, vector<16x128xf32>,
    return
  }
  func.func @transform_0(%arg0: i32) -> (i32, i32) {
    %c0_i32 = arith.constant 0 : i32
    %c0_i32_0 = arith.constant 0 : i32
    return %arg0, %c0_i32 : i32, i32
  }
  func.func @transform_1(%arg0: i32) -> (i32, i32) {
    %c0_i32 = arith.constant 0 : i32
    %c0_i32_0 = arith.constant 0 : i32
    %c0_i32_1 = arith.constant 0 : i32
    return %c0_i32, %c0_i32_0 : i32, i32
  }
  func.func @transform_2(%arg0: i32) -> (i32, i32) {
    %c0_i32 = arith.constant 0 : i32
    %c0_i32_0 = arith.constant 0 : i32
    %c0_i32_1 = arith.constant 0 : i32
    return %c0_i32, %c0_i32_0 : i32, i32
  }
  func.func @transform_3(%arg0: i32) -> (i32, i32) {
    %c0_i32 = arith.constant 0 : i32
    %c0_i32_0 = arith.constant 0 : i32
    return %arg0, %c0_i32 : i32, i32
  }
}

</mosaic_0001>

<bundles_post_ra>
// kernel: _pallas_linear.1
= control target key start
LH: loop header
LB: loop body
LE: loop exit
PB: predicated region body
PF: predicated region fallthrough
CT: control target
= control target key end

     0   :  { %8 = vsyncpa [#allocation3], 0  ;;  %s336_s0 = inlined_call_operand.hbm [shape: f32[16,32], index: 0, kind: input, shape index: {}]   ;;  %s337_s1 = inlined_call_operand.hbm [shape: f32[32,128], index: 1, kind: input, shape index: {}]   ;;  %s338_s2 = inlined_call_operand.vmem [shape: f32[1,128], index: 2, kind: input, shape index: {}]   ;;  %s339_s3 = inlined_call_operand.hbm [shape: f32[16,128], index: 3, kind: output, shape index: {}]  }
   0x1   :  { %9 = vsyncpa [#allocation6], 0 }
   0x2   :  { %10 = vsyncpa [#allocation4], 0  ;;  %s263_s12 = smov [#allocation2]   ;;  %s191_s16 = scalar_lea.hbm %s336_s0, 256 }
   0x3   :  { %s16_s13 = sshll.u32 %s263_s12, 4  ;;  %p192_p0 = scmp.ne.s32.totalorder %s336_s0, %s191_s16  ;;  %s17_s13 = int_to_ptr.vmem [resolvable:$true] %s16_s13 }
   0x4   :  { %p195_p1 = scmp.lt.u32.totalorder %s191_s16, %s336_s0 }
   0x6   :  { %p197_p2 = pnand %p195_p1, %p192_p0 }
   0x8   :  { %200 = shalt.err (!%p197_p2)
}
   0x9   :  { %s201_s21 = scalar_lea.vmem %s17_s13, 256  ;;  %p206_p4 = scmp.lt.s32.totalorder %s17_s13, %s17_s13 }
   0xa   :  { %p202_p3 = scmp.ne.s32.totalorder %s17_s13, %s201_s21  ;;  %p207_p5 = scmp.lt.s32.totalorder %s201_s21, %s201_s21 }
   0xc   :  { %p208_p6 = por %p207_p5, %p206_p4 }
   0xe   :  { %p209_p7 = pnand %p208_p6, %p202_p3 }
  0x10   :  { %212 = shalt.err (!%p209_p7)
}
  0x11   :  { %s264_s22 = smov 128   ;;  %s265_s23 = smov 8  }
  0x12   :  { %22 = dma.hbm_to_vmem [thread:$0]  %s336_s0, 256, %s17_s13, [#allocation3], %s264_s22, %s264_s22, %s265_s23  }
  0x13   :  { %s266_s26 = smov [#allocation5]   ;;  %s213_s30 = scalar_lea.hbm %s337_s1, 512 }
  0x14   :  { %s28_s27 = sshll.u32 %s266_s26, 4  ;;  %p214_p8 = scmp.ne.s32.totalorder %s337_s1, %s213_s30  ;;  %s29_s27 = int_to_ptr.vmem [resolvable:$true] %s28_s27 }
  0x15   :  { %p217_p9 = scmp.lt.u32.totalorder %s213_s30, %s337_s1 }
  0x17   :  { %p219_p10 = pnand %p217_p9, %p214_p8 }
  0x19   :  { %222 = shalt.err (!%p219_p10)
}
  0x1a   :  { %s223_s8 = scalar_lea.vmem %s29_s27, 512  ;;  %p228_p12 = scmp.lt.s32.totalorder %s29_s27, %s29_s27 }
  0x1b   :  { %p224_p11 = scmp.ne.s32.totalorder %s29_s27, %s223_s8  ;;  %p229_p13 = scmp.lt.s32.totalorder %s223_s8, %s223_s8 }
  0x1d   :  { %p230_p0 = por %p229_p13, %p228_p12 }
  0x1f   :  { %p231_p1 = pnand %p230_p0, %p224_p11 }
  0x21   :  { %234 = shalt.err (!%p231_p1)
}
  0x22   :  { %34 = dma.hbm_to_vmem [thread:$0]  %s337_s1, 512, %s29_s27, [#allocation6], %s264_s22, %s264_s22, %s265_s23  }
  0x23   :  { %257 = dma.done.wait [#allocation3], 256  }
  0x24   :  { %258 = vsyncadd [#allocation3], 4294967040 }
  0x25   :  { %259 = dma.done.wait [#allocation6], 512  }
  0x26   :  { %260 = vsyncadd [#allocation6], 4294966784  ;;  %vm56_vm0 = vcmask 261120   ;;  %v45_v0 = vld [vmem:[#allocation5] sm:$0xff]  ;;  %v46_v1 = vld [vmem:[#allocation5 + $0x8] sm:$0xff]  ;;  %s267_s11 = smov [#allocation7]  }
  0x27   :  { %v47_v2 = vld [vmem:[#allocation5 + $0x10] sm:$0xff]  ;;  %v178_v3 = vpack.c.bf16 %v46_v1, %v45_v0  ;;  %v48_v4 = vld [vmem:[#allocation5 + $0x18] sm:$0xff]  ;;  %s145_s12 = sshll.u32 %s267_s11, 4  ;;  %s146_s12 = int_to_ptr.vmem [resolvable:$true] %s145_s12 }
  0x28   :  { %v43_v5 = vld [vmem:[#allocation2] sm:$0xff]  ;;  %v182_v6 = vpack.c.bf16 %v48_v4, %v47_v2  ;;  %v44_v7 = vld [vmem:[#allocation2 + $0x8] sm:$0xff]  ;;  %s235_s13 = scalar_lea.vmem %s146_s12, 256  ;;  %p240_p3 = scmp.lt.s32.totalorder %s146_s12, %s146_s12 }
  0x29   :  { %175 = vmatprep.mubr.msk.f32.mxu0 %vm56_vm0, %v43_v5  ;;  %179 = vmatprep.subr.bf16.mxu0 %v178_v3  ;;  %v158_v8 = vld [vmem:[%s338_s2] ss:$0 sm:$0xff]  ;;  %p236_p2 = scmp.ne.s32.totalorder %s146_s12, %s235_s13  ;;  %p241_p4 = scmp.lt.s32.totalorder %s235_s13, %s235_s13 }
  0x2a   :  { %181 = vmatpush3.bf16.msra.mxu0 %v178_v3 }
  0x2b   :  { %183 = vmatprep.subr.bf16.mxu0 %v182_v6  ;;  %p242_p5 = por %p241_p4, %p240_p3 }
  0x2d   :  { %p243_p6 = pnand %p242_p5, %p236_p2 }
  0x2e   :  { %185 = vmatpush3.bf16.msra.mxu0 %v182_v6 }
  0x31   :  { %176 = vmatmul.mubr.msk.f32.vlgmr.msra.gmra.mrb[0].mxu0 %vm56_vm0, %v44_v7 }
 0x104   :  { %v177_v9 = vpop.f32.mrb[0].mxu0 }
 0x105   :  { %v135_v10 = vadd.f32 %v177_v9, %v158_v8  ;;  %v129_v11 = vpop.f32.mrb[1].mxu0 }
 0x106   :  { %v130_v12 = vadd.f32 %v158_v8, %v129_v11 }
 0x107   :  { %139 = vst [vmem:[#allocation7 + $0x8] sm:$0xff] %v135_v10 }
 0x108   :  { %138 = vst [vmem:[#allocation7] sm:$0xff] %v130_v12 }
 0x109   :  { %246 = shalt.err (!%p243_p6)
}
 0x10a   :  { %s247_s2 = scalar_lea.hbm %s339_s3, 256 }
 0x10b   :  { %p248_p7 = scmp.ne.s32.totalorder %s339_s3, %s247_s2  ;;  %p251_p8 = scmp.lt.u32.totalorder %s247_s2, %s339_s3 }
 0x10d   :  { %p253_p9 = pnand %p251_p8, %p248_p7 }
 0x10f   :  { %256 = shalt.err (!%p253_p9)
}
 0x110   :  { %151 = dma.vmem_to_hbm [thread:$0]  %s146_s12, 256, %s339_s3, [#allocation4], %s264_s22, %s264_s22, %s265_s23  }
 0x111   :  { %261 = dma.done.wait [#allocation4], 256  }
 0x112   :  { %262 = vsyncadd [#allocation4], 4294967040 }
 0x113   :  { %155 = vsyncpa [#allocation3], 1 }
 0x114   :  { %156 = vsyncpa [#allocation6], 1 }
 0x115   :  { %157 = vsyncpa [#allocation4], 1 }

</bundles_post_ra>
